<compile_context>
chip_gen: v7x
topology: tpu7x:2x2x1
jax: 0.10.0
libtpu: 0.0.40
codegen_flags: <defaults>
</compile_context>

<pallas_src>
import functools

import jax
import jax.numpy as jnp
from jax.experimental import pallas as pl
from jax.experimental.pallas import tpu as pltpu

_FUSED_BYTES_LIMIT = 2 * 1024 * 1024   # padded f32 footprint below which we fuse
_POOL_TARGET_BYTES = 4 * 1024 * 1024   # pool pass block budget
_APPLY_TARGET_BYTES = 2 * 1024 * 1024  # apply pass block budget


def _round_up(x, m):
    return (x + m - 1) // m * m


def _largest_tile(n, g, cap):
    """Largest t with t % g == 0, n % t == 0 and t <= cap (assumes n % g == 0)."""
    cap = max(g, min(cap, n))
    best = g
    for t in range(g, cap + 1, g):
        if n % t == 0:
            best = t
    return best


def _choose_tiles(rows, lanes, itemsize, target_bytes, lane_cap=8192, row_cap=1024):
    """Pick (row_tile, lane_tile) that exactly divide (rows, lanes), stay lane-dense,
    hit ~target_bytes per block, and leave >= 2 row blocks when rows allow it
    (so a 'parallel' row axis uses both v7x TensorCores)."""
    rcap = row_cap
    if rows >= 16:
        rcap = min(rcap, rows // 2)
    rt = _largest_tile(rows, 8, rcap)
    lcap = min(lane_cap, max(128, target_bytes // (rt * itemsize)))
    lt = _largest_tile(lanes, 128, lcap)
    # Grow rows back toward the byte budget if the lane tile came out small.
    rcap2 = min(rcap, max(8, target_bytes // (lt * itemsize)))
    rt = _largest_tile(rows, 8, rcap2)
    return rt, lt


# --------------------------------------------------------------------------- #
# Fused single-launch kernel (small feature maps): x stays resident in VMEM.
# --------------------------------------------------------------------------- #
def _fused_kernel(x_ref, w1t_ref, b1_ref, w2_ref, b2_ref, o_ref, *, inv_hw):
    x = x_ref[...]                                                    # (B, C, HW)
    # Global average pool: lane reduction, f32 accumulation.
    pooled = jnp.sum(x.astype(jnp.float32), axis=-1, keepdims=True) * inv_hw  # (B, C, 1)
    # 1x1 conv #1:  h[b,o] = relu(sum_c pooled[b,c] * w1[o,c] + b1[o])
    #   (B,C,1) * (1,C,Cr) -> (B,C,Cr), sublane-reduce -> (B,1,Cr)
    h = jnp.sum(pooled * w1t_ref[...][None, :, :], axis=1, keepdims=True)
    h = jnp.maximum(h + b1_ref[...], 0.0)                             # (B, 1, Cr)
    # 1x1 conv #2:  s[b,c] = sum_o h[b,o] * w2[c,o] + b2[c]
    #   (B,1,Cr) * (1,C,Cr) -> (B,C,Cr), lane-reduce -> (B,C,1)
    s = jnp.sum(h * w2_ref[...][None, :, :], axis=-1, keepdims=True) + b2_ref[...]
    # Residual folded:  x + x*sigmoid(s) == x * (1 + sigmoid(s))
    scale = (1.0 + jax.nn.sigmoid(s)).astype(x.dtype)                 # (B, C, 1)
    o_ref[...] = (x * scale).astype(o_ref.dtype)


# --------------------------------------------------------------------------- #
# Two-pass streaming path (large feature maps).
# --------------------------------------------------------------------------- #
def _pool_kernel(x_ref, o_ref, acc_ref, *, inv_hw, lane_chunks):
    j = pl.program_id(1)

    @pl.when(j == 0)
    def _():
        acc_ref[...] = jnp.zeros_like(acc_ref)

    # Lane-dense (RT, 128) f32 accumulator: plain VPU adds every step, no
    # cross-lane XLU work and no narrow (RT, 1) read-modify-write in the loop.
    x = x_ref[...].astype(jnp.float32)                 # (RT, LT), LT = 128*lane_chunks
    acc = acc_ref[...]
    for k in range(lane_chunks):                       # static unroll
        acc = acc + x[:, k * 128:(k + 1) * 128]
    acc_ref[...] = acc

    @pl.when(j == pl.num_programs(1) - 1)
    def _():
        # Single cross-lane reduction + 1/HW scale per row block.
        o_ref[...] = jnp.sum(acc_ref[...], axis=-1, keepdims=True) * inv_hw


def _apply_kernel(x_ref, s_ref, o_ref):
    # out = x * (1 + sigmoid(...)); computed in x.dtype (bf16 stays bf16),
    # scale block is (RT, 1) and broadcasts along lanes.
    o_ref[...] = x_ref[...] * s_ref[...]


# --------------------------------------------------------------------------- #
# Wrapper
# --------------------------------------------------------------------------- #
def ca_layer_v2(x_nchw, w1, b1, w2, b2, *, fused_bytes_limit=_FUSED_BYTES_LIMIT):
    """Channel attention: x + x * sigmoid(W2 relu(W1 avgpool(x) + b1) + b2).

    x_nchw: (B, C, H, W).  w1: (C//r, C), b1: (C//r,), w2: (C, C//r), b2: (C,)
    (1x1 Conv2d weights squeezed to 2D, biases as in PyTorch).
    """
    B, C, H, W = x_nchw.shape
    Cr = w1.shape[0]
    HW = H * W
    R = B * C
    dtype = x_nchw.dtype

    w1t = jnp.asarray(w1, jnp.float32).T               # (C, Cr)
    w2f = jnp.asarray(w2, jnp.float32)                 # (C, Cr)
    b1f = jnp.asarray(b1, jnp.float32)                 # (Cr,)
    b2f = jnp.asarray(b2, jnp.float32)                 # (C,)

    # ---- Fused path: whole (padded) x fits easily in VMEM -> one launch. ----
    padded_f32_bytes = B * _round_up(C, 8) * _round_up(HW, 128) * 4
    if padded_f32_bytes <= fused_bytes_limit:
        out3d = pl.pallas_call(
            functools.partial(_fused_kernel, inv_hw=1.0 / HW),
            out_shape=jax.ShapeDtypeStruct((B, C, HW), dtype),
        )(x_nchw.reshape(B, C, HW), w1t, b1f.reshape(1, 1, Cr), w2f,
          b2f.reshape(1, C, 1))
        return out3d.reshape(B, C, H, W)

    # ---- Two-pass path: pool -> tiny jnp MLP -> apply. ----
    aligned = (R % 8 == 0) and (HW % 128 == 0)
    Rp = _round_up(R, 8)
    HWp = _round_up(HW, 128)
    x2d = x_nchw.reshape(R, HW)
    # Zero-pad only for unaligned shapes (aligned shapes stream x directly).
    xp = x2d if aligned else jnp.pad(x2d, ((0, Rp - R), (0, HWp - HW)))
    itemsize = x_nchw.dtype.itemsize

    # Pass 1: global average pool.  Only its input block is double-buffered, so
    # it can use a larger (~4 MiB) block than the apply pass.
    RTp, LTp = _choose_tiles(Rp, HWp, itemsize, _POOL_TARGET_BYTES)
    pooled = pl.pallas_call(
        functools.partial(_pool_kernel, inv_hw=1.0 / HW, lane_chunks=LTp // 128),
        out_shape=jax.ShapeDtypeStruct((Rp, 1), jnp.float32),
        grid_spec=pltpu.PrefetchScalarGridSpec(
            num_scalar_prefetch=0,
            grid=(Rp // RTp, HWp // LTp),
            in_specs=[pl.BlockSpec((RTp, LTp), lambda i, j: (i, j))],
            out_specs=pl.BlockSpec((RTp, 1), lambda i, j: (i, 0)),
            scratch_shapes=[pltpu.VMEM((RTp, 128), jnp.float32)]),
        compiler_params=pltpu.CompilerParams(
            dimension_semantics=("parallel", "arbitrary")),
    )(xp)

    # Squeeze/excite MLP: a few KFLOPs on a (B, C) matrix -> plain XLA (fuses
    # with the slice/reshape glue; no dedicated kernel launch or HBM roundtrip).
    p_bc = pooled[:R, 0].reshape(B, C)
    hmid = jnp.maximum(p_bc @ w1t + b1f[None, :], 0.0)            # (B, Cr)
    s_bc = hmid @ w2f.T + b2f[None, :]                            # (B, C)
    scale = (1.0 + jax.nn.sigmoid(s_bc)).astype(dtype).reshape(R, 1)
    if not aligned:
        scale = jnp.pad(scale, ((0, Rp - R), (0, 0)), constant_values=1)

    # Pass 2: elementwise out = x * scale, both grid axes parallel.
    RTa, LTa = _choose_tiles(Rp, HWp, itemsize, _APPLY_TARGET_BYTES)
    out2d = pl.pallas_call(
        _apply_kernel,
        out_shape=jax.ShapeDtypeStruct((Rp, HWp), dtype),
        grid_spec=pltpu.PrefetchScalarGridSpec(
            num_scalar_prefetch=0,
            grid=(Rp // RTa, HWp // LTa),
            in_specs=[pl.BlockSpec((RTa, LTa), lambda i, j: (i, j)),
                      pl.BlockSpec((RTa, 1), lambda i, j: (i, 0))],
            out_specs=pl.BlockSpec((RTa, LTa), lambda i, j: (i, j)),
        ),
        compiler_params=pltpu.CompilerParams(
            dimension_semantics=("parallel", "parallel")),
    )(xp, scale)

    if not aligned:
        out2d = out2d[:R, :HW]
    return out2d.reshape(B, C, H, W)


# --------------------------------------------------------------------------- #
# Reference + tests
# --------------------------------------------------------------------------- #
def _reference(x, w1, b1, w2, b2):
    pooled = jnp.mean(x, axis=(2, 3), keepdims=True)                 # (B,C,1,1)
    h = jnp.einsum('oc,bcxy->boxy', w1, pooled) + b1[None, :, None, None]
    h = jnp.maximum(h, 0.0)
    s = jnp.einsum('oc,bcxy->boxy', w2, h) + b2[None, :, None, None]
    return x + x * jax.nn.sigmoid(s)


def _make_inputs(key, B, C, H, W, reduction):
    Cr = max(1, C // reduction)
    kx, k1, kb1, k2, kb2 = jax.random.split(key, 5)
    x = jax.random.normal(kx, (B, C, H, W), dtype=jnp.float32)
    w1 = jax.random.normal(k1, (Cr, C), dtype=jnp.float32) * 0.1
    b1 = jax.random.normal(kb1, (Cr,), dtype=jnp.float32) * 0.1
    w2 = jax.random.normal(k2, (C, Cr), dtype=jnp.float32) * 0.1
    b2 = jax.random.normal(kb2, (C,), dtype=jnp.float32) * 0.1
    return x, w1, b1, w2, b2


if __name__ == "__main__":
    fn = jax.jit(ca_layer_v2)
    fn_two_pass = jax.jit(functools.partial(ca_layer_v2, fused_bytes_limit=0))

    keys = jax.random.split(jax.random.PRNGKey(0), 4)

    # 1) Fused single-kernel path (small, aligned): B=2, C=8, 16x16, reduction=4.
    x, w1, b1, w2, b2 = _make_inputs(keys[0], 2, 8, 16, 16, 4)
    out = jax.block_until_ready(fn(x, w1, b1, w2, b2))
    ref = _reference(x, w1, b1, w2, b2)
    assert jnp.allclose(out, ref, atol=1e-5, rtol=1e-5), "fused aligned mismatch"

    # 2) Fused path with non-tile-aligned shapes: B=3, C=6, 10x13, reduction=3.
    x, w1, b1, w2, b2 = _make_inputs(keys[1], 3, 6, 10, 13, 3)
    out = jax.block_until_ready(fn(x, w1, b1, w2, b2))
    ref = _reference(x, w1, b1, w2, b2)
    assert jnp.allclose(out, ref, atol=1e-5, rtol=1e-5), "fused unaligned mismatch"

    # 3) Two-pass (tiled streaming) path, aligned -> zero-copy, no padding.
    x, w1, b1, w2, b2 = _make_inputs(keys[2], 2, 32, 64, 64, 4)
    out = jax.block_until_ready(fn_two_pass(x, w1, b1, w2, b2))
    ref = _reference(x, w1, b1, w2, b2)
    assert jnp.allclose(out, ref, atol=1e-5, rtol=1e-5), "two-pass aligned mismatch"

    # 4) Two-pass path, padded fallback for unaligned shapes.
    x, w1, b1, w2, b2 = _make_inputs(keys[3], 3, 6, 10, 13, 3)
    out = jax.block_until_ready(fn_two_pass(x, w1, b1, w2, b2))
    ref = _reference(x, w1, b1, w2, b2)
    assert jnp.allclose(out, ref, atol=1e-5, rtol=1e-5), "two-pass padded mismatch"

    print("KERNEL_OK")
</pallas_src>

<mosaic_0001>
module attributes {stable_mosaic.version = 11 : i64} {
  func.func @_fused_kernel(%arg0: memref<2x8x256xf32, #tpu.memory_space<vmem>>, %arg1: memref<8x2xf32, #tpu.memory_space<vmem>>, %arg2: memref<1x1x2xf32, #tpu.memory_space<vmem>>, %arg3: memref<8x2xf32, #tpu.memory_space<vmem>>, %arg4: memref<1x8x1xf32, #tpu.memory_space<vmem>>, %arg5: memref<2x8x256xf32, #tpu.memory_space<vmem>>) attributes {dimension_semantics = [], scalar_prefetch = 0 : i64, scratch_operands = 0 : i64, tpu.core_type = #tpu.core_type<tc>} {
    %c0 = arith.constant 0 : index
    %c0_0 = arith.constant 0 : index
    %c0_1 = arith.constant 0 : index
    %0 = vector.load %arg0[%c0, %c0_0, %c0_1] : memref<2x8x256xf32, #tpu.memory_space<vmem>>, vector<2x8x256xf32>
    %cst = arith.constant dense<0.000000e+00> : vector<2x8xf32>
    %1 = vector.multi_reduction <add>, %0, %cst [2] : vector<2x8x256xf32> to vector<2x8xf32>
    %2 = vector.shape_cast %1 : vector<2x8xf32> to vector<2x8x1xf32>
    %cst_2 = arith.constant 3.906250e-03 : f32
    %3 = vector.broadcast %cst_2 : f32 to vector<2x8x1xf32>
    %4 = arith.mulf %2, %3 : vector<2x8x1xf32>
    %c0_3 = arith.constant 0 : index
    %c0_4 = arith.constant 0 : index
    %5 = vector.load %arg1[%c0_3, %c0_4] : memref<8x2xf32, #tpu.memory_space<vmem>>, vector<8x2xf32>
    %6 = vector.shape_cast %5 : vector<8x2xf32> to vector<1x8x2xf32>
    %7 = vector.broadcast %4 : vector<2x8x1xf32> to vector<2x8x2xf32>
    %8 = vector.broadcast %6 : vector<1x8x2xf32> to vector<2x8x2xf32>
    %9 = arith.mulf %7, %8 : vector<2x8x2xf32>
    %cst_5 = arith.constant dense<0.000000e+00> : vector<2x2xf32>
    %10 = vector.multi_reduction <add>, %9, %cst_5 [1] : vector<2x8x2xf32> to vector<2x2xf32>
    %11 = vector.shape_cast %10 : vector<2x2xf32> to vector<2x1x2xf32>
    %c0_6 = arith.constant 0 : index
    %c0_7 = arith.constant 0 : index
    %c0_8 = arith.constant 0 : index
    %12 = vector.load %arg2[%c0_6, %c0_7, %c0_8] : memref<1x1x2xf32, #tpu.memory_space<vmem>>, vector<1x1x2xf32>
    %13 = vector.broadcast %12 : vector<1x1x2xf32> to vector<2x1x2xf32>
    %14 = arith.addf %11, %13 : vector<2x1x2xf32>
    %cst_9 = arith.constant 0.000000e+00 : f32
    %15 = vector.broadcast %cst_9 : f32 to vector<2x1x2xf32>
    %16 = arith.maximumf %14, %15 : vector<2x1x2xf32>
    %c0_10 = arith.constant 0 : index
    %c0_11 = arith.constant 0 : index
    %17 = vector.load %arg3[%c0_10, %c0_11] : memref<8x2xf32, #tpu.memory_space<vmem>>, vector<8x2xf32>
    %18 = vector.shape_cast %17 : vector<8x2xf32> to vector<1x8x2xf32>
    %19 = vector.broadcast %16 : vector<2x1x2xf32> to vector<2x8x2xf32>
    %20 = vector.broadcast %18 : vector<1x8x2xf32> to vector<2x8x2xf32>
    %21 = arith.mulf %19, %20 : vector<2x8x2xf32>
    %cst_12 = arith.constant dense<0.000000e+00> : vector<2x8xf32>
    %22 = vector.multi_reduction <add>, %21, %cst_12 [2] : vector<2x8x2xf32> to vector<2x8xf32>
    %23 = vector.shape_cast %22 : vector<2x8xf32> to vector<2x8x1xf32>
    %c0_13 = arith.constant 0 : index
    %c0_14 = arith.constant 0 : index
    %c0_15 = arith.constant 0 : index
    %24 = vector.load %arg4[%c0_13, %c0_14, %c0_15] : memref<1x8x1xf32, #tpu.memory_space<vmem>>, vector<1x8x1xf32>
    %25 = vector.broadcast %24 : vector<1x8x1xf32> to vector<2x8x1xf32>
    %26 = arith.addf %23, %25 : vector<2x8x1xf32>
    %27 = arith.negf %26 : vector<2x8x1xf32>
    %28 = math.exp %27 : vector<2x8x1xf32>
    %cst_16 = arith.constant 1.000000e+00 : f32
    %29 = vector.broadcast %cst_16 : f32 to vector<2x8x1xf32>
    %30 = arith.addf %29, %28 : vector<2x8x1xf32>
    %31 = arith.divf %29, %30 : vector<2x8x1xf32>
    %cst_17 = arith.constant 1.000000e+00 : f32
    %32 = vector.broadcast %cst_17 : f32 to vector<2x8x1xf32>
    %33 = arith.addf %32, %31 : vector<2x8x1xf32>
    %34 = vector.broadcast %33 : vector<2x8x1xf32> to vector<2x8x256xf32>
    %35 = arith.mulf %0, %34 : vector<2x8x256xf32>
    %c0_18 = arith.constant 0 : index
    %c0_19 = arith.constant 0 : index
    %c0_20 = arith.constant 0 : index
    %36 = vector.load %arg5[%c0_18, %c0_19, %c0_20] : memref<2x8x256xf32, #tpu.memory_space<vmem>>, vector<2x8x256xf32>
    tpu.vector_store %arg5[%c0_18, %c0_19, %c0_20], %35 {strides = array<i32>} : memref<2x8x256xf32, #tpu.memory_space<vmem>>, vector<2x8x256xf32>,
    return
  }
}

</mosaic_0001>

<bundles_post_ra>
// kernel: ca_layer_v2.1
= control target key start
LH: loop header
LB: loop body
LE: loop exit
PB: predicated region body
PF: predicated region fallthrough
CT: control target
= control target key end

     0   :  { %vm35_vm0 = vcmask 15360   ;;  %v56_v18 = vlaneseq  ;;  %v124_v42 = vmov 0   ;;  %s211_s0 = inlined_call_operand.vmem [shape: f32[2,8,256], index: 0, kind: input, shape index: {}]   ;;  %s212_s1 = inlined_call_operand.vmem [shape: f32[8,2], index: 1, kind: input, shape index: {}]   ;;  %s213_s2 = inlined_call_operand.vmem [shape: f32[1,1,2], index: 2, kind: input, shape index: {}]   ;;  %s214_s3 = inlined_call_operand.vmem [shape: f32[8,2], index: 3, kind: input, shape index: {}]   ;;  %s215_s4 = inlined_call_operand.vmem [shape: f32[1,8,1], index: 4, kind: input, shape index: {}]   ;;  %s216_s5 = inlined_call_operand.vmem [shape: f32[2,8,256], index: 5, kind: output, shape index: {}]  }
   0x1   :  { %v158_v0 = vld [vmem:[%s211_s0] sm:$0xff]  ;;  %v163_v1 = vld [vmem:[%s211_s0 + $0x8] sm:$0xff]  ;;  %v168_v2 = vld [vmem:[%s211_s0 + $0x10] sm:$0xff]  ;;  %114 = vset.pattern.permute.xlu0 %v124_v42  ;;  %115 = vset.pattern.permute.xlu1 %v124_v42 }
   0x2   :  { %v24_v3 = vadd.f32 %v163_v1, %v158_v0  ;;  %v175_v4 = vld [vmem:[%s211_s0 + $0x18] sm:$0xff]  ;;  %v32_v6 = vld [vmem:[%s212_s1] sm:$0xff]  ;;  %v57_v23 = vshrl.u32 %v56_v18, 7 }
   0x3   :  { %v27_v5 = vadd.f32 %v175_v4, %v168_v2  ;;  %v50_v25 = vld [vmem:[%s213_s2] sm:$0x1] }
   0x4   :  { %25 = vadd.xlane.f32.xlu0 %v24_v3  ;;  %v58_v29 = vsub.s32 0, %v57_v23  ;;  %v55_v33 = vld [vmem:[%s214_s3] sm:$0xff] }
   0x5   :  { %v72_v43 = vld [vmem:[%s215_s4] sm:$0xff] }
   0x8   :  { %28 = vadd.xlane.f32.xlu0 %v27_v5 }
  0x91   :  { %v26_v7 = vpop.xlane.xlu0 %25 }
  0x92   :  { %v30_v8 = vmul.f32 0.00390625, %v26_v7 }
  0x94   :  { %v33_v9 = vmul.f32 %v32_v6, %v30_v8 }
  0x95   :  { %v29_v10 = vpop.xlane.xlu0 %28 }
  0x96   :  { %v31_v11 = vmul.f32 0.00390625, %v29_v10  ;;  %v36_v12 = vsel %vm35_vm0, %v33_v9, 0.0 }
  0x97   :  { %v37_v13 = vrot.slane %v36_v12, 4 }
  0x98   :  { %v34_v14 = vmul.f32 %v32_v6, %v31_v11 }
  0x99   :  { %v38_v15 = vadd.f32 %v37_v13, %v36_v12 }
  0x9a   :  { %v43_v16 = vsel %vm35_vm0, %v34_v14, 0.0 }
  0x9b   :  { %v39_v17 = vrot.slane %v38_v15, 2  ;;  %v44_v19 = vrot.slane %v43_v16, 4 }
  0x9d   :  { %v40_v20 = vadd.f32 %v39_v17, %v38_v15  ;;  %v45_v21 = vadd.f32 %v44_v19, %v43_v16 }
  0x9f   :  { %v41_v22 = vrot.slane %v40_v20, 1  ;;  %v46_v24 = vrot.slane %v45_v21, 2 }
  0xa1   :  { %v42_v26 = vadd.f32 %v41_v22, %v40_v20  ;;  %v47_v27 = vadd.f32 %v46_v24, %v45_v21 }
  0xa3   :  { %v51_v28 = vadd.f32 %v50_v25, %v42_v26  ;;  %v48_v30 = vrot.slane %v47_v27, 1 }
  0xa5   :  { %v53_v31 = vmax.f32 %v51_v28, 0.0  ;;  %v49_v32 = vadd.f32 %v48_v30, %v47_v27 }
  0xa7   :  { %v59_v34 = vrot.slane %v53_v31, %v58_v29  ;;  %v52_v35 = vadd.f32 %v50_v25, %v49_v32 }
  0xa9   :  { %v64_v36 = vmul.f32 %v59_v34, %v55_v33  ;;  %v54_v37 = vmax.f32 %v52_v35, 0.0 }
  0xab   :  { %v66_v38 = vsel %vm35_vm0, %v64_v36, 0.0  ;;  %v63_v39 = vrot.slane %v54_v37, %v58_v29 }
  0xac   :  { %67 = vadd.xlane.f32.xlu1 %v66_v38 }
  0xad   :  { %v65_v40 = vmul.f32 %v63_v39, %v55_v33 }
  0xaf   :  { %v69_v41 = vsel %vm35_vm0, %v65_v40, 0.0 }
  0xb0   :  { %70 = vadd.xlane.f32.xlu1 %v69_v41 }
 0x139   :  { %v68_v44 = vpop.xlane.xlu1 %67 }
 0x13a   :  { %v73_v45 = vadd.f32 %v72_v43, %v68_v44 }
 0x13c   :  { %v111_v46 = vmul.f32 -1.442695, %v73_v45 }
 0x13d   :  { %v71_v47 = vpop.xlane.xlu1 %70 }
 0x13e   :  { %116 = vpow2.f32 %v111_v46  ;;  %v74_v48 = vadd.f32 %v72_v43, %v71_v47 }
 0x140   :  { %v112_v49 = vmul.f32 -1.442695, %v74_v48 }
 0x142   :  { %118 = vpow2.f32 %v112_v49 }
 0x148   :  { %v117_v50 = vpop.eup %116 }
 0x149   :  { %v81_v51 = vadd.f32 1.0, %v117_v50 }
 0x14b   :  { %120 = vrcp.f32 %v81_v51 }
 0x14c   :  { %v119_v52 = vpop.eup %118 }
 0x14d   :  { %v82_v53 = vadd.f32 1.0, %v119_v52 }
 0x14f   :  { %122 = vrcp.f32 %v82_v53 }
 0x155   :  { %v121_v54 = vpop.eup %120 }
 0x156   :  { %v87_v55 = vadd.f32 1.0, %v121_v54 }
 0x158   :  { %91 = vperm.xlu0 %114, %v87_v55  }
 0x159   :  { %v123_v56 = vpop.eup %122 }
 0x15a   :  { %v88_v57 = vadd.f32 1.0, %v123_v56 }
 0x15c   :  { %96 = vperm.xlu1 %115, %v88_v57  }
 0x1d7   :  { %v92_v58 = vpop.permute.xlu0 %91 }
 0x1d8   :  { %v99_v59 = vmul.f32 %v92_v58, %v158_v0  ;;  %v100_v60 = vmul.f32 %v92_v58, %v163_v1 }
 0x1da   :  { %103 = vst [vmem:[%s216_s5] sm:$0xff] %v99_v59  ;;  %104 = vst [vmem:[%s216_s5 + $0x8] sm:$0xff] %v100_v60 }
 0x1db   :  { %v97_v61 = vpop.permute.xlu1 %96 }
 0x1dc   :  { %v101_v62 = vmul.f32 %v97_v61, %v168_v2  ;;  %v102_v63 = vmul.f32 %v97_v61, %v175_v4 }
 0x1de   :  { %105 = vst [vmem:[%s216_s5 + $0x10] sm:$0xff] %v101_v62  ;;  %106 = vst [vmem:[%s216_s5 + $0x18] sm:$0xff] %v102_v63 }

</bundles_post_ra>
